<compile_context>
chip_gen: v6e
topology: v6e:2x2x1
jax: 0.10.0
libtpu: 0.0.40
codegen_flags: <defaults>
</compile_context>

<pallas_src>
import jax
import jax.numpy as jnp
from jax.experimental import pallas as pl
from jax.experimental.pallas import tpu as pltpu


def _gate_kernel(ctx_ref, cc_ref, w1_ref, wd_ref, bd_ref, out_ref):
    # ctx_ref : [1, tile_t, 2H]  contexts tile (native dtype)
    # cc_ref  : [1, 1, H]        per-batch  comment_context @ W1[2H:] + b1  (f32)
    # w1_ref  : [2H, H]          contexts half of W1 (native dtype)
    # wd_ref  : [H, 1]           w2[:,0] - w2[:,1]   (f32)
    # bd_ref  : [1, 1]           b2[0]  - b2[1]      (f32)
    # out_ref : [1, tile_t, 2]
    ctx = ctx_ref[0]                                              # [tile_t, 2H]

    # linear1 (contexts half) on the MXU with f32 accumulation; the comment
    # half arrives precomputed per batch and broadcasts over the tile rows.
    h = jnp.dot(ctx, w1_ref[...], preferred_element_type=jnp.float32)
    h = jnp.maximum(h + cc_ref[0], 0.0)                           # [tile_t, H]

    # 2-class softmax == sigmoid of the logit difference.
    d = jnp.dot(h, wd_ref[...], preferred_element_type=jnp.float32) + bd_ref[...]
    g0 = 1.0 / (1.0 + jnp.exp(-d))                                # [tile_t, 1]
    out = jnp.concatenate([g0, 1.0 - g0], axis=-1)                # [tile_t, 2]
    out_ref[0] = out.astype(out_ref.dtype)


def post_select_gate(contexts, comment_context, w1, b1, w2, b2, *, max_tile_t=512):
    """contexts: [B, T, 2H], comment_context: [B, 2H] -> gates [B, T, 2].

    w1: [4H, H] (pre-transposed vs. torch's [out, in]), b1: [H]
    w2: [H, 2],  b2: [2]
    """
    B, T, twoH = contexts.shape
    H = w1.shape[1]
    assert w1.shape[0] == 2 * twoH

    # --- tiny precompute in plain JAX (B rows; negligible) -----------------
    w1_ctx = w1[:twoH].astype(contexts.dtype)                     # [2H, H]
    cc_term = (comment_context @ w1[twoH:] + b1)                  # [B, H]
    cc_term = cc_term.reshape(B, 1, H).astype(jnp.float32)

    w_diff = (w2[:, 0] - w2[:, 1]).reshape(H, 1).astype(jnp.float32)
    b_diff = (b2[0] - b2[1]).reshape(1, 1).astype(jnp.float32)

    # --- tiling over the sequence axis --------------------------------------
    # tile_t is either the full T (small sequences) or a multiple of 8; a
    # ragged last tile is handled by Pallas boundary clamping (garbage rows in
    # the padding region are never stored past T).
    tile_t = T if T <= max_tile_t else max_tile_t
    grid = (B, pl.cdiv(T, tile_t))

    out = pl.pallas_call(
        _gate_kernel,
        out_shape=jax.ShapeDtypeStruct((B, T, 2), contexts.dtype),
        grid_spec=pltpu.PrefetchScalarGridSpec(
            num_scalar_prefetch=0,
            grid=grid,
            in_specs=[
                pl.BlockSpec((1, tile_t, twoH), lambda b, t: (b, t, 0)),  # contexts
                pl.BlockSpec((1, 1, H), lambda b, t: (b, 0, 0)),          # cc_term
                pl.BlockSpec((twoH, H), lambda b, t: (0, 0)),             # w1_ctx
                pl.BlockSpec((H, 1), lambda b, t: (0, 0)),                # w_diff
                pl.BlockSpec((1, 1), lambda b, t: (0, 0)),                # b_diff
            ],
            out_specs=pl.BlockSpec((1, tile_t, 2), lambda b, t: (b, t, 0)),
        ),
        compiler_params=pltpu.CompilerParams(
            dimension_semantics=("parallel", "parallel")),
    )(contexts, cc_term, w1_ctx, w_diff, b_diff)

    return out


def _reference(contexts, comment_context, w1, b1, w2, b2):
    B, T, twoH = contexts.shape
    cc = jnp.broadcast_to(comment_context[:, None, :], (B, T, twoH))
    x = jnp.concatenate([contexts, cc], axis=-1)
    h = jnp.maximum(x @ w1 + b1, 0.0)
    logits = h @ w2 + b2
    return jax.nn.softmax(logits, axis=-1)


if __name__ == "__main__":
    # config.encoder_hidden_size = 32 -> linear1: 128 -> 32, linear2: 32 -> 2
    H = 32           # encoder_hidden_size
    B, T = 2, 8      # batch, sequence length
    twoH = 2 * H     # contexts / comment_context feature dim

    key = jax.random.PRNGKey(0)
    k1, k2, k3, k4, k5, k6 = jax.random.split(key, 6)

    contexts = jax.random.normal(k1, (B, T, twoH), dtype=jnp.float32)
    comment_context = jax.random.normal(k2, (B, twoH), dtype=jnp.float32)

    # Deterministic synthetic parameters (torch Linear stores [out,in]; kept
    # pre-transposed as [in,out] for the kernel).
    w1 = 0.05 * jax.random.normal(k3, (4 * H, H), dtype=jnp.float32)
    b1 = 0.05 * jax.random.normal(k4, (H,), dtype=jnp.float32)
    w2 = 0.05 * jax.random.normal(k5, (H, 2), dtype=jnp.float32)
    b2 = 0.05 * jax.random.normal(k6, (2,), dtype=jnp.float32)

    gates = post_select_gate(contexts, comment_context, w1, b1, w2, b2)
    gates = jax.block_until_ready(gates)

    ref = _reference(contexts, comment_context, w1, b1, w2, b2)
    assert gates.shape == (B, T, 2)
    assert jnp.allclose(gates, ref, atol=1e-5, rtol=1e-5)

    print("KERNEL_OK")
</pallas_src>

<mosaic_0001>
module attributes {stable_mosaic.version = 11 : i64} {
  func.func @_gate_kernel(%arg0: i32, %arg1: i32, %arg2: memref<1x8x64xf32, #tpu.memory_space<vmem>>, %arg3: memref<1x1x32xf32, #tpu.memory_space<vmem>>, %arg4: memref<64x32xf32, #tpu.memory_space<vmem>>, %arg5: memref<32x1xf32, #tpu.memory_space<vmem>>, %arg6: memref<1x1xf32, #tpu.memory_space<vmem>>, %arg7: memref<1x8x2xf32, #tpu.memory_space<vmem>>) attributes {dimension_semantics = [#tpu.dimension_semantics<parallel>, #tpu.dimension_semantics<parallel>], iteration_bounds = array<i64: 2, 1>, scalar_prefetch = 0 : i64, scratch_operands = 0 : i64, tpu.core_type = #tpu.core_type<tc>, window_params = [{transform_indices = @transform_0, window_bounds = array<i64: 1, 8, 64>}, {transform_indices = @transform_1, window_bounds = array<i64: 1, 1, 32>}, {pipeline_mode = #tpu.pipeline_mode<synchronous>, transform_indices = @transform_2, window_bounds = array<i64: 64, 32>}, {pipeline_mode = #tpu.pipeline_mode<synchronous>, transform_indices = @transform_3, window_bounds = array<i64: 32, 1>}, {pipeline_mode = #tpu.pipeline_mode<synchronous>, transform_indices = @transform_4, window_bounds = array<i64: 1, 1>}, {transform_indices = @transform_5, window_bounds = array<i64: 1, 8, 2>}]} {
    %c0 = arith.constant 0 : index
    %c0_0 = arith.constant 0 : index
    %c0_1 = arith.constant 0 : index
    %0 = vector.load %arg2[%c0, %c0_0, %c0_1] : memref<1x8x64xf32, #tpu.memory_space<vmem>>, vector<1x8x64xf32>
    %1 = vector.shape_cast %0 : vector<1x8x64xf32> to vector<8x64xf32>
    %c0_2 = arith.constant 0 : index
    %c0_3 = arith.constant 0 : index
    %2 = vector.load %arg4[%c0_2, %c0_3] : memref<64x32xf32, #tpu.memory_space<vmem>>, vector<64x32xf32>
    %cst = arith.constant dense<0.000000e+00> : vector<8x32xf32>
    %3 = tpu.matmul %1, %2, %cst {dimension_numbers = #tpu.dot_dimension_numbers<[1], [0], [0], [1], [0, 0, 1, 1], [], []>} : vector<8x64xf32>, vector<64x32xf32>, vector<8x32xf32> -> vector<8x32xf32>
    %c0_4 = arith.constant 0 : index
    %c0_5 = arith.constant 0 : index
    %c0_6 = arith.constant 0 : index
    %4 = vector.load %arg3[%c0_4, %c0_5, %c0_6] : memref<1x1x32xf32, #tpu.memory_space<vmem>>, vector<1x1x32xf32>
    %5 = vector.shape_cast %4 : vector<1x1x32xf32> to vector<1x32xf32>
    %6 = vector.broadcast %5 : vector<1x32xf32> to vector<8x32xf32>
    %7 = arith.addf %3, %6 : vector<8x32xf32>
    %cst_7 = arith.constant 0.000000e+00 : f32
    %8 = vector.broadcast %cst_7 : f32 to vector<8x32xf32>
    %9 = arith.maximumf %7, %8 : vector<8x32xf32>
    %c0_8 = arith.constant 0 : index
    %c0_9 = arith.constant 0 : index
    %10 = vector.load %arg5[%c0_8, %c0_9] : memref<32x1xf32, #tpu.memory_space<vmem>>, vector<32x1xf32>
    %cst_10 = arith.constant dense<0.000000e+00> : vector<8x1xf32>
    %11 = tpu.matmul %9, %10, %cst_10 {dimension_numbers = #tpu.dot_dimension_numbers<[1], [0], [0], [1], [0, 0, 1, 1], [], []>} : vector<8x32xf32>, vector<32x1xf32>, vector<8x1xf32> -> vector<8x1xf32>
    %c0_11 = arith.constant 0 : index
    %c0_12 = arith.constant 0 : index
    %12 = vector.load %arg6[%c0_11, %c0_12] : memref<1x1xf32, #tpu.memory_space<vmem>>, vector<1x1xf32>
    %13 = vector.broadcast %12 : vector<1x1xf32> to vector<8x1xf32>
    %14 = arith.addf %11, %13 : vector<8x1xf32>
    %cst_13 = arith.constant 0.000000e+00 : f32
    %15 = vector.broadcast %cst_13 : f32 to vector<8x1xf32>
    %16 = arith.subf %15, %14 : vector<8x1xf32>
    %17 = math.exp %16 : vector<8x1xf32>
    %cst_14 = arith.constant 1.000000e+00 : f32
    %18 = vector.broadcast %cst_14 : f32 to vector<8x1xf32>
    %19 = arith.addf %18, %17 : vector<8x1xf32>
    %cst_15 = arith.constant 1.000000e+00 : f32
    %20 = vector.broadcast %cst_15 : f32 to vector<8x1xf32>
    %21 = arith.divf %20, %19 : vector<8x1xf32>
    %cst_16 = arith.constant 1.000000e+00 : f32
    %22 = vector.broadcast %cst_16 : f32 to vector<8x1xf32>
    %23 = arith.subf %22, %21 : vector<8x1xf32>
    %24 = tpu.concatenate %21, %23 in 1 : vector<8x1xf32>, vector<8x1xf32> -> vector<8x2xf32>
    %c0_17 = arith.constant 0 : index
    %c0_18 = arith.constant 0 : index
    %c0_19 = arith.constant 0 : index
    %25 = vector.load %arg7[%c0_17, %c0_18, %c0_19] : memref<1x8x2xf32, #tpu.memory_space<vmem>>, vector<1x8x2xf32>
    %26 = vector.shape_cast %25 : vector<1x8x2xf32> to vector<8x2xf32>
    %27 = vector.shape_cast %24 : vector<8x2xf32> to vector<1x8x2xf32>
    tpu.vector_store %arg7[%c0_17, %c0_18, %c0_19], %27 {strides = array<i32>} : memref<1x8x2xf32, #tpu.memory_space<vmem>>, vector<1x8x2xf32>,
    return
  }
  func.func @transform_0(%arg0: i32, %arg1: i32) -> (i32, i32, i32) {
    %c0_i32 = arith.constant 0 : i32
    %c0_i32_0 = arith.constant 0 : i32
    return %arg0, %arg1, %c0_i32 : i32, i32, i32
  }
  func.func @transform_1(%arg0: i32, %arg1: i32) -> (i32, i32, i32) {
    %c0_i32 = arith.constant 0 : i32
    %c0_i32_0 = arith.constant 0 : i32
    %c0_i32_1 = arith.constant 0 : i32
    return %arg0, %c0_i32, %c0_i32_0 : i32, i32, i32
  }
  func.func @transform_2(%arg0: i32, %arg1: i32) -> (i32, i32) {
    %c0_i32 = arith.constant 0 : i32
    %c0_i32_0 = arith.constant 0 : i32
    %c0_i32_1 = arith.constant 0 : i32
    return %c0_i32, %c0_i32_0 : i32, i32
  }
  func.func @transform_3(%arg0: i32, %arg1: i32) -> (i32, i32) {
    %c0_i32 = arith.constant 0 : i32
    %c0_i32_0 = arith.constant 0 : i32
    %c0_i32_1 = arith.constant 0 : i32
    return %c0_i32, %c0_i32_0 : i32, i32
  }
  func.func @transform_4(%arg0: i32, %arg1: i32) -> (i32, i32) {
    %c0_i32 = arith.constant 0 : i32
    %c0_i32_0 = arith.constant 0 : i32
    %c0_i32_1 = arith.constant 0 : i32
    return %c0_i32, %c0_i32_0 : i32, i32
  }
  func.func @transform_5(%arg0: i32, %arg1: i32) -> (i32, i32, i32) {
    %c0_i32 = arith.constant 0 : i32
    %c0_i32_0 = arith.constant 0 : i32
    return %arg0, %arg1, %c0_i32 : i32, i32, i32
  }
}

</mosaic_0001>

<bundles_post_ra>
// kernel: tpu_custom_call.1
= control target key start
LH: loop header
LB: loop body
LE: loop exit
PB: predicated region body
PF: predicated region fallthrough
CT: control target
= control target key end

     0   :  { %s689_s20 = smov 0   ;;  %s691_s21 = smov 0   ;;  %s769_s0 = inlined_call_operand.vmem [shape: f32[2,8,64], index: 0, kind: input, shape index: {}]   ;;  %s770_s1 = inlined_call_operand.vmem [shape: f32[2,1,32], index: 1, kind: input, shape index: {}]   ;;  %s771_s2 = inlined_call_operand.vmem [shape: f32[64,32], index: 2, kind: input, shape index: {}]   ;;  %s772_s3 = inlined_call_operand.vmem [shape: f32[32,1], index: 3, kind: input, shape index: {}]   ;;  %s773_s4 = inlined_call_operand.<no memory space> [shape: f32[1,1], index: 4, kind: input, shape index: {}]   ;;  %s774_s5 = inlined_call_operand.vmem [shape: f32[2,8,2], index: 5, kind: output, shape index: {}]  }
   0x1   :  { %v10_v0 = vstv %s773_s4  ;;  %s693_s22 = smov 0  }
   0x2   :  { %11 = vst [vmem:[#allocation2] sm:$0x1] %v10_v0 }
   0x3 LB: > { %s29_s4 = sadd.s32 1, %s647_s21  ;;  %p545_p0 = scmp.ge.s32.totalorder %s651_s22, 1  ;;  %s651_s22 = sphi %s693_s22, %s17_s22   ;;  %s647_s21 = sphi %s691_s21, %s776_s21   ;;  %s643_s20 = sphi %s689_s20, %s775_s20  }
   0x4   : > { %p31_p1 = scmp.ge.s32.totalorder %s29_s4, 2  ;;  %p215_p2 = scmp.lt.s32.totalorder %s651_s22, 3 }
   0x6   : > { %s778_s4 = smov (%p31_p1, %s29_s4), 0  ;;  %p216_p3 = pnand %p545_p0, %p215_p2 }
   0x7   : > { %p250_p4 = scmp.lt.s32.totalorder (!%p216_p3), %s643_s20, 1  ;;  %s655_s7 = smov (!%p216_p3), 1  }
   0x8   : > { %219 = sbr.rel (%p216_p3) target bundleno = 575 (0x23f), region = 40 }
   0xd   : > { %v275_v1 = vld [vmem:[%s771_s2 + $0x38] sm:$0xff]  ;;  %v653_v2 = vmov 0.0   ;;  %v274_v3 = vld [vmem:[%s771_s2 + $0x30] sm:$0xff]  ;;  %vm654_vm0 = vmmov 0   ;;  %v273_v5 = vld [vmem:[%s771_s2 + $0x28] sm:$0xff]  ;;  %s780_s20 = smov (!%p250_p4, %s643_s20), 1 }
   0xe   : > { %568 = vmatprep.subr.mxu0 %v653_v2  ;;  %584 = vmatprep.mubr.msk.f32.mxu0 %vm654_vm0, %v653_v2  ;;  %v361_v4 = vld [vmem:[%s772_s3 + $0x18] sm:$0xff]  ;;  %v272_v6 = vld [vmem:[%s771_s2 + $0x20] sm:$0xff]  ;;  %s546_s10 = sshll.u32 %s780_s20, 3  ;;  %v270_v8 = vld [vmem:[%s771_s2 + $0x10] sm:$0xff]  ;;  %vm283_vm1 = vcmask 523264   ;;  %s259_s6 = scalar_lea.vmem %s770_s1, %s780_s20  ;;  %vm369_vm2 = vcmask 261120  }
   0xf   : > { %569 = vmatpush3.msra.mxu0 %v275_v1  ;;  %587 = vmatprep.subr.mxu1 %v653_v2  ;;  %v271_v7 = vld [vmem:[%s771_s2 + $0x18] sm:$0xff]  ;;  %v269_v9 = vld [vmem:[%s771_s2 + $0x8] sm:$0xff]  ;;  %s256_s17 = scalar_lea.vmem %s769_s0, %s546_s10  ;;  %v268_v10 = vld [vmem:[%s771_s2] sm:$0xff]  ;;  %vm454_vm3 = vcmask 7168   ;;  %s266_s11 = scalar_lea.vmem %s774_s5, %s546_s10  ;;  %vm456_vm4 = vcmask 15360  }
  0x10   : > { %570 = vmatprep.subr.mxu0 %v653_v2  ;;  %588 = vmatpush3.msra.mxu1 %v361_v4  ;;  %v267_v11 = vld [vmem:[%s256_s17] sm:$0xff]  ;;  %v360_v12 = vld [vmem:[%s772_s3 + $0x10] sm:$0xff]  ;;  %v359_v13 = vld [vmem:[%s772_s3 + $0x8] sm:$0xff] }
  0x11   : > { %571 = vmatpush3.msra.mxu0 %v274_v3  ;;  %589 = vmatprep.subr.mxu1 %v653_v2  ;;  %v358_v14 = vld [vmem:[%s772_s3] sm:$0xff] }
  0x12   : > { %572 = vmatprep.subr.mxu0 %v653_v2  ;;  %595 = vmatprep.mubr.msk.f32.mxu1 %vm654_vm0, %v653_v2  ;;  %v548_v15 = vld [vmem:[%s259_s6] ss:$0 sm:$0xff] }
  0x13   : > { %573 = vmatpush3.msra.mxu0 %v273_v5  ;;  %590 = vmatpush3.msra.mxu1 %v360_v12  ;;  %v550_v20 = vld [vmem:[#allocation2] ss:$0 sm:$0xff] }
  0x14   : > { %574 = vmatprep.subr.mxu0 %v653_v2  ;;  %591 = vmatprep.subr.mxu1 %v653_v2 }
  0x15   : > { %575 = vmatpush3.msra.mxu0 %v272_v6  ;;  %592 = vmatpush3.msra.mxu1 %v359_v13 }
  0x16   : > { %576 = vmatprep.subr.mxu0 %v653_v2  ;;  %593 = vmatprep.subr.mxu1 %v653_v2 }
  0x17   : > { %577 = vmatpush3.msra.mxu0 %v271_v7  ;;  %594 = vmatpush3.msra.mxu1 %v358_v14 }
  0x18   : > { %578 = vmatprep.subr.mxu0 %v653_v2 }
  0x19   : > { %579 = vmatpush3.msra.mxu0 %v270_v8 }
  0x1a   : > { %580 = vmatprep.subr.mxu0 %v653_v2 }
  0x1b   : > { %581 = vmatpush3.msra.mxu0 %v269_v9 }
  0x1c   : > { %582 = vmatprep.subr.mxu0 %v653_v2 }
  0x1d   : > { %583 = vmatpush3.msra.mxu0 %v268_v10 }
  0x1e   : > { %585 = vmatmul.mubr.msk.f32.vlgmr.msra.gmra.mxu0 %vm283_vm1, %v267_v11 }
  0xde   : > { %v353_v16 = vpop.f32.mrf.mxu0 }
  0xdf   : > { %v354_v17 = vadd.f32 %v548_v15, %v353_v16 }
  0xe0   : > { %v586_v18 = vpop.f32.mrf.mxu0 }
  0xe1   : > { %v357_v19 = vmax.f32 %v354_v17, 0.0 }
  0xe3   : > { %596 = vmatmul.mubr.msk.f32.vlgmr.msra.gmra.mxu1 %vm369_vm2, %v357_v19 }
 0x1a3   : > { %v439_v21 = vpop.f32.mrf.mxu1 }
 0x1a4   : > { %v440_v22 = vadd.f32 %v550_v20, %v439_v21 }
 0x1a5   : > { %v597_v23 = vpop.f32.mrf.mxu1 }
 0x1a6   : > { %v443_v24 = vsub.f32 0.0, %v440_v22 }
 0x1a8   : > { %v444_v25 = vmul.f32 1.442695, %v443_v24 }
 0x1aa   : > { %625 = vpow2.f32 %v444_v25 }
 0x1b7   : > { %v626_v26 = vpop.eup %625 }
 0x1b8   : > { %v446_v27 = vadd.f32 1.0, %v626_v26 }
 0x1ba   : > { %627 = vrcp.f32 %v446_v27 }
 0x1c7   : > { %v628_v28 = vpop.eup %627 }
 0x1c8   : > { %v449_v29 = vsub.f32 1.0, %v628_v28 }
 0x1ca   : > { %451 = vrot.lane.b32.xlu0 %v449_v29, %s655_s7 }
 0x23c   : > { %v452_v30 = vpop.permute.xlu0 %451 }
 0x23d   : > { %v455_v31 = vsel %vm454_vm3, %v628_v28, %v452_v30 }
 0x23e   : > { %457 = vst.msk [vmem:[%s266_s11] sm:$0xff] %vm456_vm4, %v455_v31 }
 0x23f PF: > { %s17_s22 = sadd.s32 1, %s651_s22   ;;  %s775_s20 = smov %s647_s21 }
 0x240   : > { %p14_p5 = scmp.ge.s32.totalorder %s17_s22, 4   ;;  %s776_s21 = smov %s778_s4 }
 0x242   :  { %16 = sbr.rel (!%p14_p5) target bundleno = 3 (0x3), region = 73 }

</bundles_post_ra>
